<compile_context>
chip_gen: v7x
topology: tpu7x:2x2x1
jax: 0.10.0
libtpu: 0.0.40
codegen_flags: <defaults>
</compile_context>

<pallas_src>
import math

import jax
import jax.numpy as jnp
from jax.experimental import pallas as pl
from jax.experimental.pallas import tpu as pltpu


def _round_up(n, m):
    return ((n + m - 1) // m) * m


def _pick_tile(n, candidates):
    """Largest candidate that evenly divides n, else n itself (full extent)."""
    for c in candidates:
        if n >= c and n % c == 0:
            return c
    return n


def _maybe_vmem_limit(block_bytes):
    """Raise the scoped-VMEM cap only if the (double-buffered) tiles need it."""
    need = 2 * block_bytes + (2 << 20)      # double-buffering + headroom
    if need <= (16 << 20):                  # v5e default scoped limit
        return None
    return int(min(need, 96 << 20))


# ----------------------------------------------------------------------------
# Pass 1: d_a = row_normalize(adj * mask)   (computed once, not per batch)
# ----------------------------------------------------------------------------
def _row_normalize_kernel(adj_ref, mask_ref, da_ref):
    # adj_ref / mask_ref : [tn, N]  f32
    # da_ref             : [tn, N]  compute dtype (bf16 or f32)
    a = adj_ref[...] * mask_ref[...]
    deg = jnp.sum(a, axis=1, keepdims=True)          # [tn, 1], f32
    inv = 1.0 / deg
    inv = jnp.where(inv == jnp.inf, 0.0, inv)        # torch zeroes only +inf
    da_ref[...] = (a * inv).astype(da_ref.dtype)     # diag(inv) @ adj'


# ----------------------------------------------------------------------------
# Pass 2: out = relu((d_a @ x) @ W^T + b), tiled over (batch tiles, node rows)
# ----------------------------------------------------------------------------
def _gcn_fc_kernel(da_ref, x_ref, w_ref, b_ref, o_ref):
    # da_ref : [tn, N]        row tile of the normalized adjacency
    # x_ref  : [Bt, N, C_in]  batch tile (full N = contraction dim)
    # w_ref  : [C_in, Cp]     FC weight, transposed + zero-padded to 128 lanes
    # b_ref  : [1, Cp]        bias, zero-padded, f32
    # o_ref  : [Bt, tn, Cp]
    da = da_ref[...]
    w = w_ref[...]
    bias = b_ref[...]
    bt = x_ref.shape[0]
    tn = da.shape[0]

    # Aggregation: h[b] = d_a_tile @ x[b]   (f32 accumulation on the MXU).
    hs = [jnp.dot(da, x_ref[bb], preferred_element_type=jnp.float32)
          for bb in range(bt)]                                   # each [tn, C_in]
    # Batch-folded FC: one [Bt*tn, C_in] @ [C_in, Cp] matmul (larger M for MXU).
    h = jnp.concatenate(hs, axis=0).astype(w.dtype)              # [Bt*tn, C_in]
    out = jnp.dot(h, w, preferred_element_type=jnp.float32) + bias
    out = jnp.maximum(out, 0.0)                                  # ReLU
    for bb in range(bt):
        o_ref[bb] = out[bb * tn:(bb + 1) * tn].astype(o_ref.dtype)


def adapt_gcn_operation(x, adj, mask, fc_weight, fc_bias, *,
                        compute_dtype=jnp.bfloat16):
    """x: [B, N, C_in], adj/mask: [N, N], fc_weight: [C_out, C_in], fc_bias: [C_out]."""
    B, N, C_in = x.shape
    C_out = fc_weight.shape[0]
    Cp = _round_up(C_out, 128)                      # lane-dense output width
    csize = jnp.dtype(compute_dtype).itemsize
    osize = jnp.dtype(x.dtype).itemsize

    tn = _pick_tile(N, (1024, 512, 256, 128))       # node-row tile
    Bt = _pick_tile(B, (8, 4, 2))                   # batch tile

    # ---- Pass 1: normalized adjacency, computed once. ----------------------
    norm_block_bytes = tn * N * (4 + 4 + csize)
    d_a = pl.pallas_call(
        _row_normalize_kernel,
        out_shape=jax.ShapeDtypeStruct((N, N), compute_dtype),
        grid_spec=pltpu.PrefetchScalarGridSpec(
            num_scalar_prefetch=0,
            grid=(N // tn,),
            in_specs=[pl.BlockSpec((tn, N), lambda i: (i, 0)),
                      pl.BlockSpec((tn, N), lambda i: (i, 0))],
            out_specs=pl.BlockSpec((tn, N), lambda i: (i, 0)),
        ),
        compiler_params=pltpu.CompilerParams(
            dimension_semantics=("parallel",),
            vmem_limit_bytes=_maybe_vmem_limit(norm_block_bytes)),
    )(adj.astype(jnp.float32), mask.astype(jnp.float32))

    # ---- Pass 2: aggregation + FC + ReLU. -----------------------------------
    # Pad W/bias to Cp output lanes (unmasked, lane-dense stores; sliced below).
    w_pad = jnp.zeros((C_in, Cp), compute_dtype)
    w_pad = w_pad.at[:, :C_out].set(fc_weight.T.astype(compute_dtype))
    b_pad = jnp.zeros((1, Cp), jnp.float32)
    b_pad = b_pad.at[:, :C_out].set(fc_bias.astype(jnp.float32))
    x_c = x.astype(compute_dtype)

    block_bytes = (tn * N * csize                    # d_a row tile
                   + Bt * N * C_in * csize           # x batch tile
                   + C_in * Cp * csize               # W
                   + Cp * 4                          # bias
                   + Bt * tn * Cp * osize)           # out tile

    out_padded = pl.pallas_call(
        _gcn_fc_kernel,
        out_shape=jax.ShapeDtypeStruct((B, N, Cp), x.dtype),
        grid_spec=pltpu.PrefetchScalarGridSpec(
            num_scalar_prefetch=0,
            grid=(B // Bt, N // tn),
            in_specs=[
                pl.BlockSpec((tn, N), lambda b, n: (n, 0)),            # d_a rows
                pl.BlockSpec((Bt, N, C_in), lambda b, n: (b, 0, 0)),   # x tile
                pl.BlockSpec((C_in, Cp), lambda b, n: (0, 0)),         # W^T padded
                pl.BlockSpec((1, Cp), lambda b, n: (0, 0)),            # bias padded
            ],
            out_specs=pl.BlockSpec((Bt, tn, Cp), lambda b, n: (b, n, 0)),
        ),
        compiler_params=pltpu.CompilerParams(
            dimension_semantics=("parallel", "parallel"),
            vmem_limit_bytes=_maybe_vmem_limit(block_bytes)),
    )(d_a, x_c, w_pad, b_pad)

    return out_padded[..., :C_out] if Cp != C_out else out_padded


def reference_jax(x, adj, mask, fc_weight, fc_bias):
    adjm = adj * mask
    deg = jnp.sum(adjm, axis=1)
    inv = 1.0 / deg
    inv = jnp.where(inv == jnp.inf, 0.0, inv)
    d_a = jnp.diag(inv) @ adjm
    out1 = jnp.einsum('nm,bmc->bnc', d_a, x)
    return jax.nn.relu(out1 @ fc_weight.T + fc_bias)


if __name__ == "__main__":
    # Small shapes consistent with the module's forward.
    B, N, C_in, C_out = 2, 8, 32, 32

    key = jax.random.PRNGKey(0)
    k_x, k_adj, k_mask, k_w, k_b = jax.random.split(key, 5)

    x = jax.random.normal(k_x, (B, N, C_in), dtype=jnp.float32)
    adj = jax.random.uniform(k_adj, (N, N), dtype=jnp.float32)

    # nn.Linear(in_dim, out_dim) default init: U(-1/sqrt(in_dim), 1/sqrt(in_dim))
    bound = 1.0 / math.sqrt(C_in)
    fc_weight = jax.random.uniform(k_w, (C_out, C_in), dtype=jnp.float32,
                                   minval=-bound, maxval=bound)
    fc_bias = jax.random.uniform(k_b, (C_out,), dtype=jnp.float32,
                                 minval=-bound, maxval=bound)

    # --- check 1: f32 path with the module's xavier_normal_(gain=0.0003) mask ---
    mask_std = 0.0003 * math.sqrt(2.0 / (N + N))
    mask_tiny = mask_std * jax.random.normal(k_mask, (N, N), dtype=jnp.float32)

    out_f32 = adapt_gcn_operation(x, adj, mask_tiny, fc_weight, fc_bias,
                                  compute_dtype=jnp.float32)
    out_f32 = jax.block_until_ready(out_f32)
    ref_f32 = reference_jax(x, adj, mask_tiny, fc_weight, fc_bias)
    assert out_f32.shape == (B, N, C_out)
    assert jnp.allclose(out_f32, ref_f32, atol=1e-4, rtol=1e-4), "f32 mismatch"

    # --- check 2: default bf16-MXU path (well-conditioned mask, looser tol) ---
    k_mask2 = jax.random.fold_in(key, 7)
    mask_wc = jax.random.uniform(k_mask2, (N, N), dtype=jnp.float32,
                                 minval=0.5, maxval=1.5)
    out_bf16 = adapt_gcn_operation(x, adj, mask_wc, fc_weight, fc_bias)
    out_bf16 = jax.block_until_ready(out_bf16)
    ref_bf16 = reference_jax(x, adj, mask_wc, fc_weight, fc_bias)
    assert out_bf16.shape == (B, N, C_out)
    assert jnp.allclose(out_bf16, ref_bf16, atol=5e-2, rtol=5e-2), "bf16 mismatch"

    print("KERNEL_OK")
</pallas_src>

<mosaic_0001>
module attributes {stable_mosaic.version = 11 : i64} {
  func.func @_row_normalize_kernel(%arg0: i32, %arg1: memref<8x8xf32, #tpu.memory_space<vmem>>, %arg2: memref<8x8xf32, #tpu.memory_space<vmem>>, %arg3: memref<8x8xf32, #tpu.memory_space<vmem>>) attributes {dimension_semantics = [#tpu.dimension_semantics<parallel>], iteration_bounds = array<i64: 1>, scalar_prefetch = 0 : i64, scratch_operands = 0 : i64, tpu.core_type = #tpu.core_type<tc>, window_params = [{transform_indices = @transform_0, window_bounds = array<i64: 8, 8>}, {transform_indices = @transform_1, window_bounds = array<i64: 8, 8>}, {transform_indices = @transform_2, window_bounds = array<i64: 8, 8>}]} {
    %c0 = arith.constant 0 : index
    %c0_0 = arith.constant 0 : index
    %0 = vector.load %arg1[%c0, %c0_0] : memref<8x8xf32, #tpu.memory_space<vmem>>, vector<8x8xf32>
    %c0_1 = arith.constant 0 : index
    %c0_2 = arith.constant 0 : index
    %1 = vector.load %arg2[%c0_1, %c0_2] : memref<8x8xf32, #tpu.memory_space<vmem>>, vector<8x8xf32>
    %2 = arith.mulf %0, %1 : vector<8x8xf32>
    %cst = arith.constant dense<0.000000e+00> : vector<8xf32>
    %3 = vector.multi_reduction <add>, %2, %cst [1] : vector<8x8xf32> to vector<8xf32>
    %4 = vector.shape_cast %3 : vector<8xf32> to vector<8x1xf32>
    %cst_3 = arith.constant 1.000000e+00 : f32
    %5 = vector.broadcast %cst_3 : f32 to vector<8x1xf32>
    %6 = arith.divf %5, %4 : vector<8x1xf32>
    %cst_4 = arith.constant 0x7F800000 : f32
    %7 = vector.broadcast %cst_4 : f32 to vector<8x1xf32>
    %8 = arith.cmpf oeq, %6, %7 : vector<8x1xf32>
    %cst_5 = arith.constant 0.000000e+00 : f32
    %9 = vector.broadcast %cst_5 : f32 to vector<8x1xf32>
    %10 = arith.select %8, %9, %6 : vector<8x1xi1>, vector<8x1xf32>
    %11 = vector.broadcast %10 : vector<8x1xf32> to vector<8x8xf32>
    %12 = arith.mulf %2, %11 : vector<8x8xf32>
    %c0_6 = arith.constant 0 : index
    %c0_7 = arith.constant 0 : index
    %13 = vector.load %arg3[%c0_6, %c0_7] : memref<8x8xf32, #tpu.memory_space<vmem>>, vector<8x8xf32>
    tpu.vector_store %arg3[%c0_6, %c0_7], %12 {strides = array<i32>} : memref<8x8xf32, #tpu.memory_space<vmem>>, vector<8x8xf32>,
    return
  }
  func.func @transform_0(%arg0: i32) -> (i32, i32) {
    %c0_i32 = arith.constant 0 : i32
    %c0_i32_0 = arith.constant 0 : i32
    return %arg0, %c0_i32 : i32, i32
  }
  func.func @transform_1(%arg0: i32) -> (i32, i32) {
    %c0_i32 = arith.constant 0 : i32
    %c0_i32_0 = arith.constant 0 : i32
    return %arg0, %c0_i32 : i32, i32
  }
  func.func @transform_2(%arg0: i32) -> (i32, i32) {
    %c0_i32 = arith.constant 0 : i32
    %c0_i32_0 = arith.constant 0 : i32
    return %arg0, %c0_i32 : i32, i32
  }
}

</mosaic_0001>

<bundles_post_ra>
// kernel: tpu_custom_call.1
= control target key start
LH: loop header
LB: loop body
LE: loop exit
PB: predicated region body
PF: predicated region fallthrough
CT: control target
= control target key end

     0   :  { %7 = vsyncpa [#allocation3], 0  ;;  %s196_s0 = inlined_call_operand.hbm [shape: f32[8,8], index: 0, kind: input, shape index: {}]   ;;  %s197_s1 = inlined_call_operand.hbm [shape: f32[8,8], index: 1, kind: input, shape index: {}]   ;;  %s198_s2 = inlined_call_operand.hbm [shape: f32[8,8], index: 2, kind: output, shape index: {}]  }
   0x1   :  { %8 = vsyncpa [#allocation6], 0 }
   0x2   :  { %9 = vsyncpa [#allocation4], 0  ;;  %s142_s9 = smov [#allocation2]   ;;  %s143_s11 = smov [#allocation5]  }
   0x3   :  { %s16_s10 = sshll.u32 %s142_s9, 4  ;;  %s26_s12 = sshll.u32 %s143_s11, 4  ;;  %s17_s10 = int_to_ptr.vmem [resolvable:$true] %s16_s10  ;;  %s27_s12 = int_to_ptr.vmem [resolvable:$true] %s26_s12 }
   0x4   :  { %s70_s15 = scalar_lea.hbm %s196_s0, 128 }
   0x5   :  { %p71_p0 = scmp.ne.s32.totalorder %s196_s0, %s70_s15  ;;  %p74_p1 = scmp.lt.u32.totalorder %s70_s15, %s196_s0 }
   0x7   :  { %p76_p2 = pnand %p74_p1, %p71_p0 }
   0x9   :  { %79 = shalt.err (!%p76_p2)
}
   0xa   :  { %s80_s20 = scalar_lea.vmem %s17_s10, 128  ;;  %p85_p4 = scmp.lt.s32.totalorder %s17_s10, %s17_s10 }
   0xb   :  { %p81_p3 = scmp.ne.s32.totalorder %s17_s10, %s80_s20  ;;  %p86_p5 = scmp.lt.s32.totalorder %s80_s20, %s80_s20 }
   0xd   :  { %p87_p6 = por %p86_p5, %p85_p4 }
   0xf   :  { %p88_p7 = pnand %p87_p6, %p81_p3 }
  0x11   :  { %91 = shalt.err (!%p88_p7)
}
  0x12   :  { %19 = dma.hbm_to_vmem [thread:$0]  %s196_s0, 128, %s17_s10, [#allocation3]  }
  0x13   :  { %s92_s25 = scalar_lea.hbm %s197_s1, 128 }
  0x14   :  { %p93_p8 = scmp.ne.s32.totalorder %s197_s1, %s92_s25  ;;  %p96_p9 = scmp.lt.u32.totalorder %s92_s25, %s197_s1 }
  0x16   :  { %p98_p10 = pnand %p96_p9, %p93_p8 }
  0x18   :  { %101 = shalt.err (!%p98_p10)
}
  0x19   :  { %s102_s30 = scalar_lea.vmem %s27_s12, 128  ;;  %p107_p12 = scmp.lt.s32.totalorder %s27_s12, %s27_s12 }
  0x1a   :  { %p103_p11 = scmp.ne.s32.totalorder %s27_s12, %s102_s30  ;;  %p108_p13 = scmp.lt.s32.totalorder %s102_s30, %s102_s30 }
  0x1c   :  { %p109_p0 = por %p108_p13, %p107_p12 }
  0x1e   :  { %p110_p1 = pnand %p109_p0, %p103_p11 }
  0x20   :  { %113 = shalt.err (!%p110_p1)
}
  0x21   :  { %29 = dma.hbm_to_vmem [thread:$0]  %s197_s1, 128, %s27_s12, [#allocation6]  }
  0x22   :  { %136 = dma.done.wait [#allocation3], 128  }
  0x23   :  { %137 = vsyncadd [#allocation3], 4294967168 }
  0x24   :  { %138 = dma.done.wait [#allocation6], 128  }
  0x25   :  { %139 = vsyncadd [#allocation6], 4294967168  ;;  %v36_v0 = vld [vmem:[#allocation2] sm:$0xff]  ;;  %v37_v1 = vld [vmem:[#allocation5] sm:$0xff]  ;;  %vm39_vm0 = vcmask 64512   ;;  %s144_s4 = smov [#allocation7]  }
  0x26   :  { %v38_v2 = vmul.f32 %v37_v1, %v36_v0  ;;  %s55_s5 = sshll.u32 %s144_s4, 4  ;;  %s56_s5 = int_to_ptr.vmem [resolvable:$true] %s55_s5 }
  0x27   :  { %s114_s1 = scalar_lea.vmem %s56_s5, 128  ;;  %p119_p3 = scmp.lt.s32.totalorder %s56_s5, %s56_s5 }
  0x28   :  { %v40_v3 = vsel %vm39_vm0, %v38_v2, 0.0  ;;  %p115_p2 = scmp.ne.s32.totalorder %s56_s5, %s114_s1  ;;  %p120_p4 = scmp.lt.s32.totalorder %s114_s1, %s114_s1 }
  0x29   :  { %41 = vadd.xlane.f32.xlu0 %v40_v3 }
  0x2a   :  { %p121_p5 = por %p120_p4, %p119_p3 }
  0x2c   :  { %p122_p6 = pnand %p121_p5, %p115_p2 }
  0xb6   :  { %v42_v4 = vpop.xlane.xlu0 %41 }
  0xb7   :  { %68 = vrcp.f32 %v42_v4 }
  0xc1   :  { %v69_v5 = vpop.eup %68 }
  0xc2   :  { %vm45_vm1 = vcmp.eq.f32.partialorder %v69_v5, inf }
  0xc3   :  { %v46_v6 = vsel %vm45_vm1, 0.0, %v69_v5 }
  0xc4   :  { %v47_v7 = vmul.f32 %v46_v6, %v38_v2 }
  0xc6   :  { %48 = vst.msk [vmem:[#allocation7] sm:$0xff] %vm39_vm0, %v47_v7 }
  0xc7   :  { %125 = shalt.err (!%p122_p6)
}
  0xc8   :  { %s126_s8 = scalar_lea.hbm %s198_s2, 128 }
  0xc9   :  { %p127_p7 = scmp.ne.s32.totalorder %s198_s2, %s126_s8  ;;  %p130_p8 = scmp.lt.u32.totalorder %s126_s8, %s198_s2 }
  0xcb   :  { %p132_p9 = pnand %p130_p8, %p127_p7 }
  0xcd   :  { %135 = shalt.err (!%p132_p9)
}
  0xce   :  { %58 = dma.vmem_to_hbm [thread:$0]  %s56_s5, 128, %s198_s2, [#allocation4]  }
  0xcf   :  { %140 = dma.done.wait [#allocation4], 128  }
  0xd0   :  { %141 = vsyncadd [#allocation4], 4294967168 }
  0xd1   :  { %62 = vsyncpa [#allocation3], 1 }
  0xd2   :  { %63 = vsyncpa [#allocation6], 1 }
  0xd3   :  { %64 = vsyncpa [#allocation4], 1 }

</bundles_post_ra>
